<compile_context>
chip_gen: v7x
topology: tpu7x:2x2x1
jax: 0.10.0
libtpu: 0.0.40
codegen_flags: <defaults>
</compile_context>

<pallas_src>
import functools

import jax
import jax.numpy as jnp
from jax import lax
from jax.experimental import pallas as pl
from jax.experimental.pallas import tpu as pltpu


def _round_up(x, m):
    return (x + m - 1) // m * m


def _resblock_kernel(x_ref, w1_ref, sh1_ref, w2_ref, sh2_ref, shsc_ref, o_ref,
                     *, seq_len, cp_out, c_out):
    """One row block (= several whole sequences) per grid step.

    Rows = (batch * length); x keeps its true channel count on the lane axis,
    intermediates are lane-padded to cp_out (multiple of 128), and only the
    true c_out lanes are stored back to HBM.
    """
    xb = x_ref[...].astype(jnp.bfloat16)                    # (R, Cin) bf16
    R = xb.shape[0]

    # Position-in-sequence masks for the +/-1 conv-tap shifts, broadcast once
    # to the full (R, cp_out) slab and reused by both convs (no re-broadcast;
    # JAX does not CSE broadcast_in_dim).
    pos = lax.broadcasted_iota(jnp.int32, (R, 1), 0) % seq_len
    not_first = jnp.broadcast_to(pos != 0, (R, cp_out))
    not_last = jnp.broadcast_to(pos != (seq_len - 1), (R, cp_out))

    def taps3(y):
        # y: (R, 3*cp_out) f32 with taps stacked along lanes.  Tap k=0 needs
        # x[l-1] (shift result down by 1), tap k=2 needs x[l+1] (shift up by
        # 1); boundary masks make the cross-sequence roll leak harmless.
        y0 = y[:, 0:cp_out]
        y1 = y[:, cp_out:2 * cp_out]
        y2 = y[:, 2 * cp_out:3 * cp_out]
        left = jnp.where(not_first, pltpu.roll(y0, 1, axis=0), 0.0)
        right = jnp.where(not_last, pltpu.roll(y2, R - 1, axis=0), 0.0)
        return left + y1 + right

    # conv1 (3 taps) + 1x1 shortcut fused into a single MXU push:
    # w1 lane layout = [tap0 | tap1 | tap2 | shortcut], each cp_out wide.
    y = jnp.dot(xb, w1_ref[...], preferred_element_type=jnp.float32)
    identity = y[:, 3 * cp_out:4 * cp_out] + shsc_ref[...]  # conv1x1 + folded BN
    h = jnp.maximum(taps3(y) + sh1_ref[...], 0.0)           # conv1 + BN1 + ReLU

    # conv2 + BN2 (conv bias + BN folded into w2 / sh2)
    y2 = jnp.dot(h.astype(jnp.bfloat16), w2_ref[...],
                 preferred_element_type=jnp.float32)
    out = jnp.maximum(taps3(y2) + sh2_ref[...] + identity, 0.0)

    o_ref[...] = out[:, :c_out]                              # true-channel store


def residual_block_pallas(x_ncl, params, eps=1e-5):
    """x_ncl: (N, C_in, L) float32 (PyTorch layout). Returns (N, C_out, L)."""
    N, Cin, L = x_ncl.shape
    Cout = params["w1"].shape[0]
    cp_out = _round_up(Cout, 128)

    # ---- fold conv bias + BatchNorm (eval) into weight scale / output shift ----
    def fold_bn(name):
        g, b = params[f"{name}_gamma"], params[f"{name}_beta"]
        m, v = params[f"{name}_mean"], params[f"{name}_var"]
        s = g / jnp.sqrt(v + eps)
        return s, b - m * s

    s1, t1 = fold_bn("bn1")
    s2, t2 = fold_bn("bn2")
    ssc, tsc = fold_bn("bnsc")

    def stack_k3(w, s, ci_keep):
        # w: (Co, Ci, 3) -> (ci_keep, 3*cp_out); BN scale folded, taps stacked
        # along the output/lane axis so each conv is one MXU contraction.
        co, ci = w.shape[0], w.shape[1]
        wf = jnp.transpose(w * s[:, None, None], (2, 1, 0))        # (3, Ci, Co)
        wf = jnp.pad(wf, ((0, 0), (0, ci_keep - ci), (0, cp_out - co)))
        return jnp.concatenate([wf[0], wf[1], wf[2]], axis=1)

    # conv1 taps + 1x1 shortcut fused into one (Cin, 4*cp_out) bf16 weight.
    wsc = jnp.transpose(params["wsc"][:, :, 0] * ssc[:, None], (1, 0))
    wsc = jnp.pad(wsc, ((0, 0), (0, cp_out - Cout)))               # (Cin, cp_out)
    w1s = jnp.concatenate([stack_k3(params["w1"], s1, Cin), wsc],
                          axis=1).astype(jnp.bfloat16)             # (Cin, 4*cp_out)
    w2s = stack_k3(params["w2"], s2, cp_out).astype(jnp.bfloat16)  # (cp_out, 3*cp_out)

    def pad_shift(b, s, t):                                        # folded bias + BN shift
        sh = b * s + t
        return jnp.pad(sh, (0, cp_out - Cout)).reshape(1, cp_out)

    sh1 = pad_shift(params["b1"], s1, t1)
    sh2 = pad_shift(params["b2"], s2, t2)
    shsc = pad_shift(params["bsc"], ssc, tsc)

    # ---- activations: NCL -> (N*L, Cin) rows, bf16, NO lane padding -----------
    # (one fused XLA transpose+convert pass; the kernel reads only Cin lanes)
    x_rows = jnp.transpose(x_ncl, (0, 2, 1)).reshape(N * L, Cin).astype(jnp.bfloat16)

    # ---- row-block selection ----------------------------------------------------
    rows = N * L
    # Budget the (R, 4*cp_out) f32 matmul intermediates (+ masks/h/identity) so a
    # block stays well inside v7x's 64 MiB VMEM; larger blocks amortize the
    # ~0.35 us per-step overhead on v5e/v6e.
    row_cap = max(L, min(4096, (24 * 1024 * 1024) // (40 * cp_out)))
    divs = [d for d in range(1, N + 1)
            if N % d == 0 and (d * L) % 8 == 0 and d * L <= row_cap]
    multi = [d for d in divs if N // d >= 2]   # keep >=2 grid steps for v7x's 2 TCs
    if multi:
        nb = max(multi)
    elif divs:
        nb = max(divs)
    else:
        nb = N        # no sublane-aligned divisor: single whole-array block
    R = nb * L
    grid = (rows // R,)
    # TODO(synk): tiling along L (halo rows) for very long sequences is not
    #             implemented; a single sequence must fit the VMEM budget.

    kernel = functools.partial(_resblock_kernel, seq_len=L, cp_out=cp_out,
                               c_out=Cout)
    const = lambda a: pl.BlockSpec(a.shape, lambda i: (0,) * a.ndim)
    # NOTE: constant operands are revisited every step (index_map == (0, 0));
    # with bf16 weights their double-buffered footprint is small, so the
    # default pipelining is left in place (pl.Buffered(1) would halve it).

    out_rows = pl.pallas_call(
        kernel,
        out_shape=jax.ShapeDtypeStruct((rows, Cout), jnp.float32),
        grid_spec=pltpu.PrefetchScalarGridSpec(
            num_scalar_prefetch=0,
            grid=grid,
            in_specs=[pl.BlockSpec((R, Cin), lambda i: (i, 0)),
                      const(w1s), const(sh1),
                      const(w2s), const(sh2),
                      const(shsc)],
            out_specs=pl.BlockSpec((R, Cout), lambda i: (i, 0)),
        ),
        compiler_params=pltpu.CompilerParams(
            dimension_semantics=("parallel",),
            vmem_limit_bytes=48 * 1024 * 1024),
    )(x_rows, w1s, sh1, w2s, sh2, shsc)

    out = out_rows.reshape(N, L, Cout)
    return jnp.transpose(out, (0, 2, 1))                           # -> (N, Cout, L)


# ------------------------------ pure-JAX reference ------------------------------
def residual_block_ref(x, p):
    eps = 1e-5

    def conv1d(x, w, b, pad):
        y = lax.conv_general_dilated(x, w, (1,), [(pad, pad)],
                                     dimension_numbers=("NCH", "OIH", "NCH"))
        return y + b[None, :, None]

    def bn(x, name):
        g, b = p[f"{name}_gamma"], p[f"{name}_beta"]
        m, v = p[f"{name}_mean"], p[f"{name}_var"]
        return ((x - m[None, :, None]) / jnp.sqrt(v[None, :, None] + eps)
                * g[None, :, None] + b[None, :, None])

    identity = bn(conv1d(x, p["wsc"], p["bsc"], 0), "bnsc")
    out = jax.nn.relu(bn(conv1d(x, p["w1"], p["b1"], 1), "bn1"))
    out = bn(conv1d(out, p["w2"], p["b2"], 1), "bn2")
    return jax.nn.relu(out + identity)


if __name__ == "__main__":
    N, Cin, Cout, L = 2, 4, 8, 16          # stride=1, in != out -> conv shortcut
    key = jax.random.PRNGKey(0)
    ks = jax.random.split(key, 16)

    params = {
        "w1": jax.random.normal(ks[0], (Cout, Cin, 3), jnp.float32) * 0.2,
        "b1": jax.random.normal(ks[1], (Cout,), jnp.float32) * 0.1,
        "w2": jax.random.normal(ks[2], (Cout, Cout, 3), jnp.float32) * 0.2,
        "b2": jax.random.normal(ks[3], (Cout,), jnp.float32) * 0.1,
        "wsc": jax.random.normal(ks[4], (Cout, Cin, 1), jnp.float32) * 0.2,
        "bsc": jax.random.normal(ks[5], (Cout,), jnp.float32) * 0.1,
        "bn1_gamma": 1.0 + 0.1 * jax.random.normal(ks[6], (Cout,), jnp.float32),
        "bn1_beta": 0.1 * jax.random.normal(ks[7], (Cout,), jnp.float32),
        "bn1_mean": 0.1 * jax.random.normal(ks[8], (Cout,), jnp.float32),
        "bn1_var": jnp.abs(jax.random.normal(ks[9], (Cout,), jnp.float32)) + 0.5,
        "bn2_gamma": 1.0 + 0.1 * jax.random.normal(ks[10], (Cout,), jnp.float32),
        "bn2_beta": 0.1 * jax.random.normal(ks[11], (Cout,), jnp.float32),
        "bn2_mean": 0.1 * jax.random.normal(ks[12], (Cout,), jnp.float32),
        "bn2_var": jnp.abs(jax.random.normal(ks[13], (Cout,), jnp.float32)) + 0.5,
        "bnsc_gamma": jnp.ones((Cout,), jnp.float32),
        "bnsc_beta": jnp.zeros((Cout,), jnp.float32),
        "bnsc_mean": 0.1 * jax.random.normal(ks[14], (Cout,), jnp.float32),
        "bnsc_var": jnp.abs(jax.random.normal(ks[15], (Cout,), jnp.float32)) + 0.5,
    }

    x = jax.random.normal(key, (N, Cin, L), jnp.float32)

    out = jax.block_until_ready(residual_block_pallas(x, params))
    ref = jax.block_until_ready(residual_block_ref(x, params))

    assert out.shape == (N, Cout, L), out.shape
    # bf16 MXU operands (f32 accumulation) -> looser tolerance vs. f32 reference.
    assert jnp.allclose(out, ref, atol=5e-2, rtol=5e-2), \
        f"max abs diff = {jnp.max(jnp.abs(out - ref))}"
    print("KERNEL_OK")
</pallas_src>

<mosaic_0001>
module attributes {stable_mosaic.version = 11 : i64} {
  func.func @_resblock_kernel(%arg0: i32, %arg1: memref<16x4xbf16, #tpu.memory_space<vmem>>, %arg2: memref<4x512xbf16, #tpu.memory_space<vmem>>, %arg3: memref<1x128xf32, #tpu.memory_space<vmem>>, %arg4: memref<128x384xbf16, #tpu.memory_space<vmem>>, %arg5: memref<1x128xf32, #tpu.memory_space<vmem>>, %arg6: memref<1x128xf32, #tpu.memory_space<vmem>>, %arg7: memref<16x8xf32, #tpu.memory_space<vmem>>) attributes {dimension_semantics = [#tpu.dimension_semantics<parallel>], iteration_bounds = array<i64: 2>, scalar_prefetch = 0 : i64, scratch_operands = 0 : i64, tpu.core_type = #tpu.core_type<tc>, window_params = [{transform_indices = @transform_0, window_bounds = array<i64: 16, 4>}, {pipeline_mode = #tpu.pipeline_mode<synchronous>, transform_indices = @transform_1, window_bounds = array<i64: 4, 512>}, {pipeline_mode = #tpu.pipeline_mode<synchronous>, transform_indices = @transform_2, window_bounds = array<i64: 1, 128>}, {pipeline_mode = #tpu.pipeline_mode<synchronous>, transform_indices = @transform_3, window_bounds = array<i64: 128, 384>}, {pipeline_mode = #tpu.pipeline_mode<synchronous>, transform_indices = @transform_4, window_bounds = array<i64: 1, 128>}, {pipeline_mode = #tpu.pipeline_mode<synchronous>, transform_indices = @transform_5, window_bounds = array<i64: 1, 128>}, {transform_indices = @transform_6, window_bounds = array<i64: 16, 8>}]} {
    %c0 = arith.constant 0 : index
    %c0_0 = arith.constant 0 : index
    %0 = vector.load %arg1[%c0, %c0_0] : memref<16x4xbf16, #tpu.memory_space<vmem>>, vector<16x4xbf16>
    %1 = tpu.iota {dimensions = array<i32: 0>} : vector<16x1xi32>
    %c16_i32 = arith.constant 16 : i32
    %c0_i32 = arith.constant 0 : i32
    %2 = arith.cmpi eq, %c16_i32, %c0_i32 : i32
    %c1_i32 = arith.constant 1 : i32
    %3 = arith.select %2, %c1_i32, %c16_i32 : i32
    %4 = vector.broadcast %3 : i32 to vector<16x1xi32>
    %5 = arith.remsi %1, %4 : vector<16x1xi32>
    %c0_i32_1 = arith.constant 0 : i32
    %6 = vector.broadcast %c0_i32_1 : i32 to vector<16x1xi32>
    %7 = arith.cmpi ne, %5, %6 : vector<16x1xi32>
    %c0_i32_2 = arith.constant 0 : i32
    %8 = vector.broadcast %c0_i32_2 : i32 to vector<16x1xi32>
    %9 = arith.cmpi slt, %5, %8 : vector<16x1xi32>
    %c0_i32_3 = arith.constant 0 : i32
    %10 = arith.cmpi slt, %3, %c0_i32_3 : i32
    %11 = vector.broadcast %10 : i1 to vector<16x1xi1>
    %12 = vector.broadcast %11 : vector<16x1xi1> to vector<16x1xi1>
    %13 = arith.xori %9, %12 : vector<16x1xi1>
    %14 = arith.andi %13, %7 : vector<16x1xi1>
    %15 = vector.broadcast %3 : i32 to vector<16x1xi32>
    %16 = arith.addi %5, %15 : vector<16x1xi32>
    %17 = arith.select %14, %16, %5 : vector<16x1xi1>, vector<16x1xi32>
    %c0_i32_4 = arith.constant 0 : i32
    %18 = vector.broadcast %c0_i32_4 : i32 to vector<16x1xi32>
    %19 = arith.cmpi ne, %17, %18 : vector<16x1xi32>
    %20 = vector.shape_cast %19 : vector<16x1xi1> to vector<16x1xi1>
    %21 = vector.broadcast %20 : vector<16x1xi1> to vector<16x128xi1>
    %c15_i32 = arith.constant 15 : i32
    %22 = vector.broadcast %c15_i32 : i32 to vector<16x1xi32>
    %23 = arith.cmpi ne, %17, %22 : vector<16x1xi32>
    %24 = vector.shape_cast %23 : vector<16x1xi1> to vector<16x1xi1>
    %25 = vector.broadcast %24 : vector<16x1xi1> to vector<16x128xi1>
    %c0_5 = arith.constant 0 : index
    %c0_6 = arith.constant 0 : index
    %26 = vector.load %arg2[%c0_5, %c0_6] : memref<4x512xbf16, #tpu.memory_space<vmem>>, vector<4x512xbf16>
    %cst = arith.constant dense<0.000000e+00> : vector<16x512xf32>
    %27 = tpu.matmul %0, %26, %cst {dimension_numbers = #tpu.dot_dimension_numbers<[1], [0], [0], [1], [0, 0, 1, 1], [], []>} : vector<16x4xbf16>, vector<4x512xbf16>, vector<16x512xf32> -> vector<16x512xf32>
    %28 = vector.extract_strided_slice %27 {offsets = [0, 384], sizes = [16, 128], strides = [1, 1]} : vector<16x512xf32> to vector<16x128xf32>
    %c0_7 = arith.constant 0 : index
    %c0_8 = arith.constant 0 : index
    %29 = vector.load %arg6[%c0_7, %c0_8] : memref<1x128xf32, #tpu.memory_space<vmem>>, vector<1x128xf32>
    %30 = vector.broadcast %29 : vector<1x128xf32> to vector<16x128xf32>
    %31 = arith.addf %28, %30 : vector<16x128xf32>
    %32 = vector.extract_strided_slice %27 {offsets = [0, 0], sizes = [16, 128], strides = [1, 1]} : vector<16x512xf32> to vector<16x128xf32>
    %33 = vector.extract_strided_slice %27 {offsets = [0, 128], sizes = [16, 128], strides = [1, 1]} : vector<16x512xf32> to vector<16x128xf32>
    %34 = vector.extract_strided_slice %27 {offsets = [0, 256], sizes = [16, 128], strides = [1, 1]} : vector<16x512xf32> to vector<16x128xf32>
    %c1_i32_9 = arith.constant 1 : i32
    %35 = tpu.dynamic_rotate %32 by %c1_i32_9 dim 0 : vector<16x128xf32>, i32 -> vector<16x128xf32>
    %cst_10 = arith.constant 0.000000e+00 : f32
    %36 = vector.broadcast %cst_10 : f32 to vector<16x128xf32>
    %37 = arith.select %21, %35, %36 : vector<16x128xi1>, vector<16x128xf32>
    %c15_i32_11 = arith.constant 15 : i32
    %38 = tpu.dynamic_rotate %34 by %c15_i32_11 dim 0 : vector<16x128xf32>, i32 -> vector<16x128xf32>
    %cst_12 = arith.constant 0.000000e+00 : f32
    %39 = vector.broadcast %cst_12 : f32 to vector<16x128xf32>
    %40 = arith.select %25, %38, %39 : vector<16x128xi1>, vector<16x128xf32>
    %41 = arith.addf %37, %33 : vector<16x128xf32>
    %42 = arith.addf %41, %40 : vector<16x128xf32>
    %c0_13 = arith.constant 0 : index
    %c0_14 = arith.constant 0 : index
    %43 = vector.load %arg3[%c0_13, %c0_14] : memref<1x128xf32, #tpu.memory_space<vmem>>, vector<1x128xf32>
    %44 = vector.broadcast %43 : vector<1x128xf32> to vector<16x128xf32>
    %45 = arith.addf %42, %44 : vector<16x128xf32>
    %cst_15 = arith.constant 0.000000e+00 : f32
    %46 = vector.broadcast %cst_15 : f32 to vector<16x128xf32>
    %47 = arith.maximumf %45, %46 : vector<16x128xf32>
    %48 = arith.truncf %47 : vector<16x128xf32> to vector<16x128xbf16>
    %c0_16 = arith.constant 0 : index
    %c0_17 = arith.constant 0 : index
    %49 = vector.load %arg4[%c0_16, %c0_17] : memref<128x384xbf16, #tpu.memory_space<vmem>>, vector<128x384xbf16>
    %cst_18 = arith.constant dense<0.000000e+00> : vector<16x384xf32>
    %50 = tpu.matmul %48, %49, %cst_18 {dimension_numbers = #tpu.dot_dimension_numbers<[1], [0], [0], [1], [0, 0, 1, 1], [], []>} : vector<16x128xbf16>, vector<128x384xbf16>, vector<16x384xf32> -> vector<16x384xf32>
    %51 = vector.extract_strided_slice %50 {offsets = [0, 0], sizes = [16, 128], strides = [1, 1]} : vector<16x384xf32> to vector<16x128xf32>
    %52 = vector.extract_strided_slice %50 {offsets = [0, 128], sizes = [16, 128], strides = [1, 1]} : vector<16x384xf32> to vector<16x128xf32>
    %53 = vector.extract_strided_slice %50 {offsets = [0, 256], sizes = [16, 128], strides = [1, 1]} : vector<16x384xf32> to vector<16x128xf32>
    %c1_i32_19 = arith.constant 1 : i32
    %54 = tpu.dynamic_rotate %51 by %c1_i32_19 dim 0 : vector<16x128xf32>, i32 -> vector<16x128xf32>
    %cst_20 = arith.constant 0.000000e+00 : f32
    %55 = vector.broadcast %cst_20 : f32 to vector<16x128xf32>
    %56 = arith.select %21, %54, %55 : vector<16x128xi1>, vector<16x128xf32>
    %c15_i32_21 = arith.constant 15 : i32
    %57 = tpu.dynamic_rotate %53 by %c15_i32_21 dim 0 : vector<16x128xf32>, i32 -> vector<16x128xf32>
    %cst_22 = arith.constant 0.000000e+00 : f32
    %58 = vector.broadcast %cst_22 : f32 to vector<16x128xf32>
    %59 = arith.select %25, %57, %58 : vector<16x128xi1>, vector<16x128xf32>
    %60 = arith.addf %56, %52 : vector<16x128xf32>
    %61 = arith.addf %60, %59 : vector<16x128xf32>
    %c0_23 = arith.constant 0 : index
    %c0_24 = arith.constant 0 : index
    %62 = vector.load %arg5[%c0_23, %c0_24] : memref<1x128xf32, #tpu.memory_space<vmem>>, vector<1x128xf32>
    %63 = vector.broadcast %62 : vector<1x128xf32> to vector<16x128xf32>
    %64 = arith.addf %61, %63 : vector<16x128xf32>
    %65 = arith.addf %64, %31 : vector<16x128xf32>
    %cst_25 = arith.constant 0.000000e+00 : f32
    %66 = vector.broadcast %cst_25 : f32 to vector<16x128xf32>
    %67 = arith.maximumf %65, %66 : vector<16x128xf32>
    %68 = vector.extract_strided_slice %67 {offsets = [0, 0], sizes = [16, 8], strides = [1, 1]} : vector<16x128xf32> to vector<16x8xf32>
    %c0_26 = arith.constant 0 : index
    %c0_27 = arith.constant 0 : index
    %69 = vector.load %arg7[%c0_26, %c0_27] : memref<16x8xf32, #tpu.memory_space<vmem>>, vector<16x8xf32>
    tpu.vector_store %arg7[%c0_26, %c0_27], %68 {strides = array<i32>} : memref<16x8xf32, #tpu.memory_space<vmem>>, vector<16x8xf32>,
    return
  }
  func.func @transform_0(%arg0: i32) -> (i32, i32) {
    %c0_i32 = arith.constant 0 : i32
    %c0_i32_0 = arith.constant 0 : i32
    return %arg0, %c0_i32 : i32, i32
  }
  func.func @transform_1(%arg0: i32) -> (i32, i32) {
    %c0_i32 = arith.constant 0 : i32
    %c0_i32_0 = arith.constant 0 : i32
    %c0_i32_1 = arith.constant 0 : i32
    return %c0_i32, %c0_i32_0 : i32, i32
  }
  func.func @transform_2(%arg0: i32) -> (i32, i32) {
    %c0_i32 = arith.constant 0 : i32
    %c0_i32_0 = arith.constant 0 : i32
    %c0_i32_1 = arith.constant 0 : i32
    return %c0_i32, %c0_i32_0 : i32, i32
  }
  func.func @transform_3(%arg0: i32) -> (i32, i32) {
    %c0_i32 = arith.constant 0 : i32
    %c0_i32_0 = arith.constant 0 : i32
    %c0_i32_1 = arith.constant 0 : i32
    return %c0_i32, %c0_i32_0 : i32, i32
  }
  func.func @transform_4(%arg0: i32) -> (i32, i32) {
    %c0_i32 = arith.constant 0 : i32
    %c0_i32_0 = arith.constant 0 : i32
    %c0_i32_1 = arith.constant 0 : i32
    return %c0_i32, %c0_i32_0 : i32, i32
  }
  func.func @transform_5(%arg0: i32) -> (i32, i32) {
    %c0_i32 = arith.constant 0 : i32
    %c0_i32_0 = arith.constant 0 : i32
    %c0_i32_1 = arith.constant 0 : i32
    return %c0_i32, %c0_i32_0 : i32, i32
  }
  func.func @transform_6(%arg0: i32) -> (i32, i32) {
    %c0_i32 = arith.constant 0 : i32
    %c0_i32_0 = arith.constant 0 : i32
    return %arg0, %c0_i32 : i32, i32
  }
}

</mosaic_0001>

<bundles_post_ra>
// kernel: tpu_custom_call.1
= control target key start
LH: loop header
LB: loop body
LE: loop exit
PB: predicated region body
PF: predicated region fallthrough
CT: control target
= control target key end

     0   :  { %11 = vsyncpa [#allocation3], 0  ;;  %s1037_s21 = smov 0   ;;  %s1151_s0 = inlined_call_operand.vmem [shape: bf16[32,4], index: 0, kind: input, shape index: {}]   ;;  %s1152_s1 = inlined_call_operand.vmem [shape: bf16[4,512], index: 1, kind: input, shape index: {}]   ;;  %s1153_s2 = inlined_call_operand.vmem [shape: f32[1,128], index: 2, kind: input, shape index: {}]   ;;  %s1154_s3 = inlined_call_operand.hbm [shape: bf16[128,384], index: 3, kind: input, shape index: {}]   ;;  %s1155_s4 = inlined_call_operand.vmem [shape: f32[1,128], index: 4, kind: input, shape index: {}]   ;;  %s1156_s5 = inlined_call_operand.vmem [shape: f32[1,128], index: 5, kind: input, shape index: {}]   ;;  %s1157_s6 = inlined_call_operand.vmem [shape: f32[32,8], index: 6, kind: output, shape index: {}]  }
   0x1 LB: > { %s822_s22 = sadd.s32 4294967295, %s993_s21   ;;  %p824_p0 = scmp.ge.s32.totalorder %s993_s21, 1  ;;  %s993_s21 = sphi %s1037_s21, %s17_s21  }
   0x2   : > { %p179_p1 = scmp.lt.s32.totalorder %s993_s21, 3  ;;  %s995_s23 = smov [#allocation2]  }
   0x3   : > { %s197_s24 = sshll.u32 %s995_s23, 4  ;;  %p1051_p3 = scmp.eq.s32.totalorder %s822_s22, 0  ;;  %s198_s24 = int_to_ptr.vmem [resolvable:$true] %s197_s24 }
   0x4   : > { %p1045_p2 = pnand %p824_p0, %p179_p1  ;;  %s955_s30 = scalar_lea.hbm %s1154_s3, 3072 }
   0x5   : > { %s1162_s26 = scalar_select %p1051_p3, 1, 0 }
   0x6   : > { %s1161_s25 = scalar_select %p1045_p2, 1, 0 }
   0x7   : > { %p900_p4 = pneg %p1045_p2  ;;  %p956_p6 = scmp.ne.s32.totalorder %s1154_s3, %s955_s30 }
   0x8   : > { %p962_p10 = scmp.lt.u32.totalorder %s955_s30, %s1154_s3 }
   0x9   : > { %p1059_p5 = pnand %p1051_p3, %p900_p4 }
   0xb   : > { %p957_p7 = pneg %p1059_p5 }
   0xd   : > { %p958_p8 = pnand %p957_p7, %p956_p6 }
   0xf   : > { %p959_p9 = pneg %p958_p8 }
  0x11   : > { %p964_p11 = pnand %p962_p10, %p959_p9 }
  0x13   : > { %967 = shalt.err (!%p964_p11)
}
  0x14   : > { %s968_s11 = scalar_lea.vmem %s198_s24, 3072  ;;  %p976_p1 = scmp.lt.s32.totalorder %s198_s24, %s198_s24 }
  0x15   : > { %p969_p12 = scmp.ne.s32.totalorder %s198_s24, %s968_s11  ;;  %p977_p4 = scmp.lt.s32.totalorder %s968_s11, %s968_s11 }
  0x17   : > { %p971_p13 = pnand %p969_p12, %p957_p7  ;;  %p978_p3 = por %p977_p4, %p976_p1 }
  0x19   : > { %p972_p0 = pneg %p971_p13 }
  0x1b   : > { %p979_p2 = pnand %p978_p3, %p972_p0 }
  0x1d   : > { %982 = shalt.err (!%p979_p2)
}
  0x1e   : > { %s996_s12 = smov 192   ;;  %s997_s13 = smov 12  }
  0x1f   : > { %903 = dma.hbm_to_vmem [thread:$0]  (!%p1059_p5), %s1154_s3, 3072, %s198_s24, [#allocation3], %s996_s12, %s996_s12, %s997_s13  }
  0x20   : > { %p1164_p6 = scmp.ne.s32.totalorder %s1161_s25, 0 }
  0x21   : > { %p1165_p8 = scmp.ne.s32.totalorder (!%p1164_p6), %s1162_s26, 0 }
  0x22   : > { %228 = sbr.rel (%p1164_p6) target bundleno = 514 (0x202), region = 44 }
  0x29   : > { %988 = dma.done.wait (%p1165_p8), [#allocation3], 3072  }
  0x2a   : > { %990 = vsyncadd (%p1165_p8), [#allocation3], 4294964224  ;;  %v273_v0 = vlaneseq  ;;  %v998_v1 = vmov 1983009808   ;;  %v999_v3 = vmov 0   ;;  %s829_s16 = sshll.u32 %s822_s22, 1 }
  0x2b   : > { %v321_v2 = vunpack.c.l.s4 %v998_v1  ;;  %385 = vmatprep.mubr.bf16.mxu0 %v999_v3  ;;  %428 = vmatprep.mubr.bf16.mxu1 %v999_v3  ;;  %p259_p2 = scmp.lt.s32.totalorder %s829_s16, 3  ;;  %v312_v7 = vld [vmem:[%s1152_s1] sm:$0xff]  ;;  %vm340_vm0 = vcmask 1041408   ;;  %vm336_vm1 = vcmask 31744   ;;  %v929_v18 = vld [vmem:[#allocation2 + $0x1c] ss:$12 sps:$4 sm:$0xff]  }
  0x2c   : > { %v1087_v4 = vshrl.u32 %v273_v0, 7  ;;  %v319_v9 = vcombine.high %v312_v7, %v312_v7  ;;  %v925_v13 = vld [vmem:[#allocation2 + $0x4] ss:$12 sps:$4 sm:$0xff]   ;;  %v923_v17 = vld [vmem:[#allocation2] ss:$12 sps:$4 sm:$0xff]   ;;  %v1000_v20 = vmov 0.0  }
  0x2d   : > { %v322_v5 = vunpack.c.0.s8 %v321_v2  ;;  %s1171_s16 = smov (!%p259_p2, %s829_s16), 3  ;;  %v926_v19 = vld [vmem:[#allocation2 + $0x8] ss:$12 sps:$4 sm:$0xff]   ;;  %v927_v21 = vld [vmem:[#allocation2 + $0x18] ss:$12 sps:$4 sm:$0xff]   ;;  %vm1001_vm2 = vmmov 0  }
  0x2e   : > { %s830_s17 = sshll.u32 %s1171_s16, 2  ;;  %v930_v22 = vld [vmem:[#allocation2 + $0x20] ss:$12 sps:$4 sm:$0xff]   ;;  %v931_v24 = vld [vmem:[#allocation2 + $0x30] ss:$12 sps:$4 sm:$0xff]   ;;  %v275_v41 = vadd.s32 8, %v1087_v4 }
  0x2f   : > { %v325_v6 = vsub.s32 %v322_v5, %v1087_v4  ;;  %s262_s22 = scalar_lea.vmem %s1151_s0, %s830_s17  ;;  %v933_v23 = vld [vmem:[#allocation2 + $0x34] ss:$12 sps:$4 sm:$0xff]   ;;  %v937_v25 = vld [vmem:[#allocation2 + $0x4c] ss:$12 sps:$4 sm:$0xff]   ;;  %v938_v28 = vld [vmem:[#allocation2 + $0x50] ss:$12 sps:$4 sm:$0xff]  }
  0x30   : > { %v922_v14 = vld [vmem:[%s262_s22] sm:$0xff]   ;;  %v935_v27 = vld [vmem:[#allocation2 + $0x48] ss:$12 sps:$4 sm:$0xff]   ;;  %v947_v36 = vld [vmem:[#allocation2 + $0x90] ss:$12 sps:$4 sm:$0xff]   ;;  %v280_v42 = vand.u32 15, %v1087_v4 }
  0x31   : > { %v326_v8 = vrot.slane %v312_v7, %v325_v6  ;;  %v333_v12 = vrot.slane %v319_v9, %v325_v6  ;;  %v934_v26 = vld [vmem:[#allocation2 + $0x38] ss:$12 sps:$4 sm:$0xff]   ;;  %v939_v30 = vld [vmem:[#allocation2 + $0x60] ss:$12 sps:$4 sm:$0xff]   ;;  %v942_v31 = vld [vmem:[#allocation2 + $0x68] ss:$12 sps:$4 sm:$0xff]  }
  0x32   : > { %v941_v29 = vld [vmem:[#allocation2 + $0x64] ss:$12 sps:$4 sm:$0xff]   ;;  %v945_v33 = vld [vmem:[#allocation2 + $0x7c] ss:$12 sps:$4 sm:$0xff]   ;;  %v946_v34 = vld [vmem:[#allocation2 + $0x80] ss:$12 sps:$4 sm:$0xff]  }
  0x33   : > { %v334_v10 = vcombine.high %v326_v8, %v326_v8  ;;  %v342_v11 = vsel %vm340_vm0, %v326_v8, 0  ;;  %v335_v15 = vcombine.high %v333_v12, %v333_v12  ;;  %v348_v16 = vsel %vm340_vm0, %v333_v12, 0  ;;  %v943_v32 = vld [vmem:[#allocation2 + $0x78] ss:$12 sps:$4 sm:$0xff]   ;;  %v949_v35 = vld [vmem:[#allocation2 + $0x94] ss:$12 sps:$4 sm:$0xff]  }
  0x34   : > { %v950_v37 = vld [vmem:[#allocation2 + $0x98] ss:$12 sps:$4 sm:$0xff]   ;;  %v951_v39 = vld [vmem:[#allocation2 + $0xa8] ss:$12 sps:$4 sm:$0xff]   ;;  %v954_v40 = vld [vmem:[#allocation2 + $0xb0] ss:$12 sps:$4 sm:$0xff]  }
  0x35   : > { %834 = vmatprep.subr.msk.bf16.mxu0 %vm340_vm0, %v334_v10  ;;  %836 = vmatprep.subr.msk.bf16.mxu1 %vm340_vm0, %v335_v15  ;;  %v953_v38 = vld [vmem:[#allocation2 + $0xac] ss:$12 sps:$4 sm:$0xff]   ;;  %v287_v44 = vand.u32 15, %v275_v41  ;;  %vm450_vm3 = vcmp.lt.s32.totalorder %v1087_v4, 1  ;;  %vm1102_vm4 = vcmp.ne.s32.totalorder %v280_v42, 0  ;;  %vm457_vm6 = vcmp.lt.s32.totalorder %v1087_v4, 7 }
  0x36   : > { %354 = vmatpush1.bf16.msra.mxu0 %v342_v11  ;;  %397 = vmatpush1.bf16.msra.mxu1 %v348_v16  ;;  %v839_v2 = vld [vmem:[%s1153_s2] ss:$0 sm:$0xff]  ;;  %s832_s30 = sshll.u32 %s1171_s16, 3  ;;  %vm751_vm7 = vcmask 64512  }
  0x37   : > { %638 = vmatprep.subr.bf16.mxu0 %v925_v13  ;;  %876 = vmatprep.subr.bf16.mxu1 %v1000_v20  ;;  %vm1106_vm5 = vcmp.ne.s32.totalorder %v287_v44, 15  ;;  %s268_s9 = scalar_lea.vmem %s1157_s6, %s832_s30 }
  0x39   : > { %835 = vmatmul.mubr.msk.bf16.vlgmr.msra.gmra.mrb[0].mxu0 %vm336_vm1, %v922_v14  ;;  %837 = vmatmul.mubr.msk.bf16.vlgmr.msra.gmra.mrb[0].mxu1 %vm336_vm1, %v922_v14 }
  0x3a   : > { %639 = vmatpush1.bf16.msra.mxu0 %v923_v17  ;;  %670 = vmatprep.mubr.bf16.mxu0 %v999_v3 }
  0x3b   : > { %640 = vmatprep.subr.bf16.mxu0 %v929_v18  ;;  %877 = vmatpush3.bf16.msra.mxu1 %v926_v19 }
  0x3c   : > { %878 = vmatprep.subr.bf16.mxu1 %v1000_v20  ;;  %892 = vmatprep.mubr.msk.bf16.mxu1 %vm1001_vm2, %v1000_v20 }
  0x3e   : > { %641 = vmatpush1.bf16.msra.mxu0 %v927_v21 }
  0x3f   : > { %642 = vmatprep.subr.bf16.mxu0 %v933_v23  ;;  %879 = vmatpush3.bf16.msra.mxu1 %v930_v22 }
  0x40   : > { %880 = vmatprep.subr.bf16.mxu1 %v1000_v20 }
  0x42   : > { %643 = vmatpush1.bf16.msra.mxu0 %v931_v24 }
  0x43   : > { %644 = vmatprep.subr.bf16.mxu0 %v937_v25  ;;  %881 = vmatpush3.bf16.msra.mxu1 %v934_v26 }
  0x44   : > { %882 = vmatprep.subr.bf16.mxu1 %v1000_v20 }
  0x46   : > { %645 = vmatpush1.bf16.msra.mxu0 %v935_v27 }
  0x47   : > { %883 = vmatpush3.bf16.msra.mxu1 %v938_v28  ;;  %646 = vmatprep.subr.bf16.mxu0 %v941_v29 }
  0x48   : > { %884 = vmatprep.subr.bf16.mxu1 %v1000_v20 }
  0x4a   : > { %647 = vmatpush1.bf16.msra.mxu0 %v939_v30 }
  0x4b   : > { %885 = vmatpush3.bf16.msra.mxu1 %v942_v31  ;;  %648 = vmatprep.subr.bf16.mxu0 %v945_v33  ;;  %v864_v31 = vld [vmem:[%s1155_s4] ss:$0 sm:$0xff] }
  0x4c   : > { %886 = vmatprep.subr.bf16.mxu1 %v1000_v20 }
  0x4e   : > { %649 = vmatpush1.bf16.msra.mxu0 %v943_v32  ;;  %v838_v32 = vld [vmem:[%s1156_s5] ss:$0 sm:$0xff] }
  0x4f   : > { %887 = vmatpush3.bf16.msra.mxu1 %v946_v34  ;;  %650 = vmatprep.subr.bf16.mxu0 %v949_v35 }
  0x50   : > { %888 = vmatprep.subr.bf16.mxu1 %v1000_v20 }
  0x52   : > { %651 = vmatpush1.bf16.msra.mxu0 %v947_v36 }
  0x53   : > { %889 = vmatpush3.bf16.msra.mxu1 %v950_v37  ;;  %652 = vmatprep.subr.bf16.mxu0 %v953_v38 }
  0x54   : > { %890 = vmatprep.subr.bf16.mxu1 %v1000_v20 }
  0x56   : > { %653 = vmatpush1.bf16.msra.mxu0 %v951_v39 }
  0x57   : > { %891 = vmatpush3.bf16.msra.mxu1 %v954_v40 }
 0x10c   : > { %v387_v43 = vpop.f32.mrb[0].mxu0  ;;  %v430_v47 = vpop.f32.mrb[0].mxu1 }
 0x10d   : > { %v389_v45 = vpop.f32.mrb[1].mxu0  ;;  %v448_v48 = vrot.slane %v387_v43, 7  ;;  %v432_v52 = vpop.f32.mrb[1].mxu1  ;;  %v455_v56 = vrot.slane %v430_v47, 1 }
 0x10e   : > { %v391_v46 = vpop.f32.mrb[2].mxu0  ;;  %v434_v54 = vpop.f32.mrb[2].mxu1  ;;  %v446_v36 = vadd.f32 %v838_v32, %v432_v52 }
 0x10f   : > { %v449_v50 = vrot.slane %v391_v46, 7  ;;  %v393_v51 = vpop.f32.mrb[3].mxu0  ;;  %v456_v58 = vrot.slane %v434_v54, 1  ;;  %v436_v59 = vpop.f32.mrb[3].mxu1 }
 0x110   : > { %v447_v4 = vadd.f32 %v838_v32, %v436_v59 }
 0x111   : > { %v452_v55 = vsel %vm450_vm3, %v449_v50, %v448_v48  ;;  %v451_v57 = vsel %vm450_vm3, %v448_v48, %v449_v50  ;;  %v458_v63 = vsel %vm457_vm6, %v455_v56, %v456_v58  ;;  %v459_v0 = vsel %vm457_vm6, %v456_v58, %v455_v56 }
 0x112   : > { %v453_v60 = vsel %vm1102_vm4, %v452_v55, 0.0  ;;  %v463_v61 = vadd.f32 %v451_v57, %v393_v51  ;;  %v461_v1 = vsel %vm1106_vm5, %v459_v0, 0.0 }
 0x113   : > { %v462_v62 = vadd.f32 %v453_v60, %v389_v45 }
 0x114   : > { %v465_v5 = vadd.f32 %v463_v61, %v461_v1 }
 0x115   : > { %v464_v3 = vadd.f32 %v462_v62, %v458_v63 }
 0x116   : > { %v474_v7 = vadd.f32 %v839_v2, %v465_v5 }
 0x117   : > { %v473_v6 = vadd.f32 %v839_v2, %v464_v3 }
 0x118   : > { %v476_v9 = vmax.f32 %v474_v7, 0.0 }
 0x119   : > { %v475_v8 = vmax.f32 %v473_v6, 0.0 }
 0x11b   : > { %v477_v10 = vpack.c.bf16 %v476_v9, %v475_v8 }
 0x11d   : > { %671 = vmatmul.mubr.bf16.vlgmr.msra.gmra.mrb[4].mxu0 %v477_v10  ;;  %893 = vmatmul.mubr.bf16.vlgmr.msra.gmra.mrb[4].mxu1 %v477_v10 }
 0x1f0   : > { %v672_v11 = vpop.f32.mrb[4].mxu0  ;;  %v715_v12 = vpop.f32.mrb[4].mxu1 }
 0x1f1   : > { %v674_v13 = vpop.f32.mrb[5].mxu0  ;;  %v894_v14 = vpop.f32.mrb[5].mxu1  ;;  %v722_v17 = vrot.slane %v672_v11, 7  ;;  %v728_v18 = vrot.slane %v715_v12, 1 }
 0x1f2   : > { %v676_v15 = vpop.f32.mrb[6].mxu0  ;;  %v718_v16 = vpop.f32.mrb[6].mxu1 }
 0x1f3   : > { %v723_v19 = vrot.slane %v676_v15, 7  ;;  %v729_v20 = vrot.slane %v718_v16, 1  ;;  %v678_v21 = vpop.f32.mrb[7].mxu0  ;;  %v895_v22 = vpop.f32.mrb[7].mxu1 }
 0x1f5   : > { %v725_v23 = vsel %vm450_vm3, %v723_v19, %v722_v17  ;;  %v730_v24 = vsel %vm457_vm6, %v728_v18, %v729_v20  ;;  %v724_v25 = vsel %vm450_vm3, %v722_v17, %v723_v19  ;;  %v731_v26 = vsel %vm457_vm6, %v729_v20, %v728_v18 }
 0x1f6   : > { %v726_v27 = vsel %vm1102_vm4, %v725_v23, 0.0  ;;  %v733_v28 = vsel %vm1106_vm5, %v731_v26, 0.0  ;;  %v735_v29 = vadd.f32 %v724_v25, %v678_v21 }
 0x1f7   : > { %v734_v30 = vadd.f32 %v726_v27, %v674_v13 }
 0x1f8   : > { %v737_v33 = vadd.f32 %v735_v29, %v733_v28 }
 0x1f9   : > { %v736_v34 = vadd.f32 %v734_v30, %v730_v24 }
 0x1fa   : > { %v746_v35 = vadd.f32 %v864_v31, %v737_v33 }
 0x1fb   : > { %v745_v37 = vadd.f32 %v864_v31, %v736_v34 }
 0x1fc   : > { %v748_v38 = vadd.f32 %v746_v35, %v447_v4 }
 0x1fd   : > { %v747_v39 = vadd.f32 %v745_v37, %v446_v36 }
 0x1fe   : > { %v750_v41 = vmax.f32 %v748_v38, 0.0 }
 0x1ff   : > { %v749_v40 = vmax.f32 %v747_v39, 0.0 }
 0x200   : > { %753 = vst.msk [vmem:[%s268_s9 + $0x8] sm:$0xff] %vm751_vm7, %v750_v41 }
 0x201   : > { %752 = vst.msk [vmem:[%s268_s9] sm:$0xff] %vm751_vm7, %v749_v40 }
 0x202 PF: > { %s17_s21 = sadd.s32 1, %s993_s21  }
 0x203   : > { %p14_p3 = scmp.ge.s32.totalorder %s17_s21, 4  }
 0x205   :  { %16 = sbr.rel (!%p14_p3) target bundleno = 1 (0x1), region = 79 }
 0x20c   :  { %776 = vsyncpa [#allocation3], 1 }
 0x20d   :  { %778 = vsyncpa [#allocation3 + $0x1], 1 }

</bundles_post_ra>
